<compile_context>
chip_gen: v5e
topology: v5e:2x2
jax: 0.10.0
libtpu: 0.0.40
codegen_flags: <defaults>
</compile_context>

<pallas_src>
import functools

import jax
import jax.numpy as jnp
from jax import lax
from jax.experimental import pallas as pl
from jax.experimental.pallas import tpu as pltpu

# Deterministic "parameters" from the module's __init__:
#   gray_coeffs = [65.738, 129.057, 25.064] / 256, shaped (1, 3, 1, 1).
_GRAY_COEFFS = (65.738, 129.057, 25.064)


def _psnr_tile_kernel(sr_ref, hr_ref, out_ref, *,
                      th, w, h_lo, h_hi, pixel_range, coeffs, row_mask_mode):
    """One (1, 3, TH, W) row tile -> (1, 1, 1, W) per-column partial sum.

    row_mask_mode: 0 = no tile ever needs a row mask,
                   1 = every tile is masked (single-tile case),
                   2 = runtime select (mask only on edge / padded tiles).
    """
    j = pl.program_id(1)

    # Weighted gray diff, channel-by-channel so only ~2 tile-sized
    # intermediates are live at once.  Algebra folded so that
    #   diff_k = (round(clip(sr*pr, 0, 255)) - hr*pr) * g_k / (256*255)
    # which is exactly ((quantize(sr) - hr)/rgb_range) * gray_coeff_k, and the
    # pr multiplies vanish in the common rgb_range == 255 case.
    d = None
    for k in range(3):
        sr_c = sr_ref[0, k].astype(jnp.float32)
        hr_c = hr_ref[0, k].astype(jnp.float32)
        if pixel_range != 1.0:
            sr_c = sr_c * jnp.float32(pixel_range)
            hr_c = hr_c * jnp.float32(pixel_range)
        sr_q = jnp.round(jnp.clip(sr_c, 0.0, 255.0))
        term = (sr_q - hr_c) * jnp.float32(coeffs[k])
        d = term if d is None else d + term
    sq = d * d  # (th, w)

    def _rowsum_masked():
        rows = lax.broadcasted_iota(jnp.int32, (th, w), 0) + j * th
        m = (rows >= h_lo) & (rows < h_hi)   # also masks padded rows (>= H)
        return jnp.sum(jnp.where(m, sq, jnp.float32(0.0)), axis=0, keepdims=True)

    def _rowsum_plain():
        return jnp.sum(sq, axis=0, keepdims=True)

    def _emit(v):
        out_ref[...] = v.reshape(1, 1, 1, w)

    if row_mask_mode == 0:
        _emit(_rowsum_plain())
    elif row_mask_mode == 1:
        _emit(_rowsum_masked())
    else:
        needs_mask = (j * th < h_lo) | ((j + 1) * th > h_hi)

        @pl.when(needs_mask)
        def _():
            _emit(_rowsum_masked())

        @pl.when(jnp.logical_not(needs_mask))
        def _():
            _emit(_rowsum_plain())


def _pick_row_tile(h, w, target_block_bytes):
    """Pick (th, num_row_tiles).  th is a multiple of 8 (or == H) so every
    input block obeys the (8, 128) layout rule; exact division of H is
    preferred so no padded rows exist.  One (3, th, W) f32 block stays around
    `target_block_bytes`, so 2 inputs x 2 pipeline buffers fit comfortably in
    scoped VMEM on v5e / v6e / v7x."""
    row_bytes = 3 * w * 4
    max_th = max(8, min(h, target_block_bytes // row_bytes))
    if h <= max_th:
        return h, 1                              # single full-height tile
    max_th = max(8, (max_th // 8) * 8)
    th = max_th
    while th >= 8:
        if h % th == 0:
            return th, h // th                   # exact division: no padding
        th -= 8
    if row_bytes * h <= 6 * 1024 * 1024:         # awkward H but still cheap
        return h, 1
    # Last resort: padded final tile; out-of-range rows are masked in-kernel.
    return max_th, -(-h // max_th)


def psnr_ycbcr(sr, hr, scale, rgb_range, *, target_block_bytes=4 * 1024 * 1024):
    """scale / rgb_range are static Python numbers, as in the torch call."""
    n, c, h, w = sr.shape
    assert c == 3, "PSNR_ycbcr expects 3-channel (RGB) inputs"

    # Shave bounds (same semantics as the PyTorch module: no shave if scale==1).
    # TODO(synk): original module computes shave=scale+6 for scale==1 but never
    # uses it (and `hr.size == 1` is dead code); we keep the actual behavior.
    if scale != 1:
        shave = int(scale)
        h_lo, h_hi = shave, h - shave
        w_lo, w_hi = shave, w - shave
    else:
        h_lo, h_hi, w_lo, w_hi = 0, h, 0, w

    th, num_row_tiles = _pick_row_tile(h, w, target_block_bytes)

    row_mask_needed = (h_lo > 0) or (h_hi < num_row_tiles * th)
    if not row_mask_needed:
        row_mask_mode = 0
    elif num_row_tiles == 1:
        row_mask_mode = 1
    else:
        row_mask_mode = 2

    pixel_range = 255.0 / float(rgb_range)
    # gray_coeff_k / (256 * 255): absorbs both the /256 of the module buffer
    # and the 1/(pixel_range*rgb_range) from quantize + /rgb_range.
    coeffs = tuple(g / (256.0 * 255.0) for g in _GRAY_COEFFS)

    kernel = functools.partial(
        _psnr_tile_kernel,
        th=th, w=w, h_lo=h_lo, h_hi=h_hi,
        pixel_range=pixel_range, coeffs=coeffs, row_mask_mode=row_mask_mode)

    partials = pl.pallas_call(
        kernel,
        out_shape=jax.ShapeDtypeStruct((n, num_row_tiles, 1, w), jnp.float32),
        grid_spec=pltpu.PrefetchScalarGridSpec(
            num_scalar_prefetch=0,
            grid=(n, num_row_tiles),
            in_specs=[
                pl.BlockSpec((1, 3, th, w), lambda i, j: (i, 0, j, 0)),
                pl.BlockSpec((1, 3, th, w), lambda i, j: (i, 0, j, 0)),
            ],
            out_specs=pl.BlockSpec((1, 1, 1, w), lambda i, j: (i, j, 0, 0)),
        ),
        compiler_params=pltpu.CompilerParams(
            # Every grid step writes its own output block -> fully parallel
            # (lets megacore chips shard both batch and row-tile axes).
            dimension_semantics=("parallel", "parallel"),
            vmem_limit_bytes=32 * 1024 * 1024,
        ),
    )(sr, hr)

    # Column shave + global mean + -10*log10 on the tiny (N, T, W) partials.
    valid = partials[:, :, 0, w_lo:w_hi]
    count = n * (h_hi - h_lo) * (w_hi - w_lo)
    mse = jnp.sum(valid) / jnp.float32(count)
    return jnp.float32(-10.0) * jnp.log10(mse)


def _psnr_ycbcr_ref(sr, hr, scale, rgb_range):
    """Pure-JAX reference (mirrors the PyTorch forward) for a sanity check."""
    pixel_range = 255.0 / rgb_range
    sr_q = jnp.round(jnp.clip(sr * pixel_range, 0.0, 255.0)) / pixel_range
    coeffs = jnp.array(_GRAY_COEFFS, jnp.float32).reshape(1, 3, 1, 1) / 256.0
    diff = ((sr_q - hr) / rgb_range * coeffs).sum(axis=1)
    if scale == 1:
        valid = diff
    else:
        shave = scale
        valid = diff[..., shave:-shave, shave:-shave]
    mse = jnp.mean(valid ** 2)
    return -10.0 * jnp.log10(mse)


if __name__ == "__main__":
    key = jax.random.PRNGKey(0)
    k1, k2 = jax.random.split(key)

    N, C, H, W = 2, 3, 16, 16
    rgb_range = 255.0

    hr = jax.random.uniform(k1, (N, C, H, W), jnp.float32) * rgb_range
    noise = (jax.random.uniform(k2, (N, C, H, W), jnp.float32) - 0.5) * 10.0
    sr = jnp.clip(hr + noise, 0.0, rgb_range)

    def _check(res, ref):
        assert jnp.allclose(res, ref, rtol=1e-4, atol=1e-4), (res, ref)

    # Case 1: scale=2 (shaved), single row tile per image (row_mask_mode=1).
    ref2 = _psnr_ycbcr_ref(sr, hr, 2, rgb_range)
    res = psnr_ycbcr(sr, hr, 2, rgb_range)
    jax.block_until_ready(res)
    _check(res, ref2)

    # Case 2: scale=2, forced multi-row-tile path (grid=(2,2), runtime-selected
    # row mask, row_mask_mode=2).
    res_tiled = psnr_ycbcr(sr, hr, 2, rgb_range, target_block_bytes=3 * W * 4 * 8)
    jax.block_until_ready(res_tiled)
    _check(res_tiled, ref2)

    # Case 3: scale=1 (no shave), multi-tile mask-free path (row_mask_mode=0).
    ref1 = _psnr_ycbcr_ref(sr, hr, 1, rgb_range)
    res1 = psnr_ycbcr(sr, hr, 1, rgb_range, target_block_bytes=3 * W * 4 * 8)
    jax.block_until_ready(res1)
    _check(res1, ref1)

    # Case 4: scale=3, rgb_range=1.0 (exercises the pixel_range != 1 path).
    hr1 = hr / rgb_range
    sr1 = sr / rgb_range
    ref3 = _psnr_ycbcr_ref(sr1, hr1, 3, 1.0)
    res3 = psnr_ycbcr(sr1, hr1, 3, 1.0)
    jax.block_until_ready(res3)
    _check(res3, ref3)

    print("KERNEL_OK")
</pallas_src>

<mosaic_0001>
module attributes {stable_mosaic.version = 11 : i64} {
  func.func @_psnr_tile_kernel(%arg0: i32, %arg1: i32, %arg2: memref<1x3x16x16xf32, #tpu.memory_space<vmem>>, %arg3: memref<1x3x16x16xf32, #tpu.memory_space<vmem>>, %arg4: memref<1x1x1x16xf32, #tpu.memory_space<vmem>>) attributes {dimension_semantics = [#tpu.dimension_semantics<parallel>, #tpu.dimension_semantics<parallel>], iteration_bounds = array<i64: 2, 1>, scalar_prefetch = 0 : i64, scratch_operands = 0 : i64, tpu.core_type = #tpu.core_type<tc>, window_params = [{transform_indices = @transform_0, window_bounds = array<i64: 1, 3, 16, 16>}, {transform_indices = @transform_1, window_bounds = array<i64: 1, 3, 16, 16>}, {transform_indices = @transform_2, window_bounds = array<i64: 1, 1, 1, 16>}]} {
    %c0 = arith.constant 0 : index
    %c0_0 = arith.constant 0 : index
    %c0_1 = arith.constant 0 : index
    %c0_2 = arith.constant 0 : index
    %0 = vector.load %arg2[%c0, %c0_0, %c0_1, %c0_2] : memref<1x3x16x16xf32, #tpu.memory_space<vmem>>, vector<1x1x16x16xf32>
    %1 = vector.shape_cast %0 : vector<1x1x16x16xf32> to vector<16x16xf32>
    %c0_3 = arith.constant 0 : index
    %c0_4 = arith.constant 0 : index
    %c0_5 = arith.constant 0 : index
    %c0_6 = arith.constant 0 : index
    %2 = vector.load %arg3[%c0_3, %c0_4, %c0_5, %c0_6] : memref<1x3x16x16xf32, #tpu.memory_space<vmem>>, vector<1x1x16x16xf32>
    %3 = vector.shape_cast %2 : vector<1x1x16x16xf32> to vector<16x16xf32>
    %cst = arith.constant 0.000000e+00 : f32
    %cst_7 = arith.constant 2.550000e+02 : f32
    %4 = vector.broadcast %cst : f32 to vector<16x16xf32>
    %5 = arith.maximumf %4, %1 : vector<16x16xf32>
    %6 = vector.broadcast %cst_7 : f32 to vector<16x16xf32>
    %7 = arith.minimumf %6, %5 : vector<16x16xf32>
    %8 = math.roundeven %7 : vector<16x16xf32>
    %9 = arith.subf %8, %3 : vector<16x16xf32>
    %cst_8 = arith.constant 0.00100701593 : f32
    %10 = vector.broadcast %cst_8 : f32 to vector<16x16xf32>
    %11 = arith.mulf %9, %10 : vector<16x16xf32>
    %c0_9 = arith.constant 0 : index
    %c1 = arith.constant 1 : index
    %c0_10 = arith.constant 0 : index
    %c0_11 = arith.constant 0 : index
    %12 = vector.load %arg2[%c0_9, %c1, %c0_10, %c0_11] : memref<1x3x16x16xf32, #tpu.memory_space<vmem>>, vector<1x1x16x16xf32>
    %13 = vector.shape_cast %12 : vector<1x1x16x16xf32> to vector<16x16xf32>
    %c0_12 = arith.constant 0 : index
    %c1_13 = arith.constant 1 : index
    %c0_14 = arith.constant 0 : index
    %c0_15 = arith.constant 0 : index
    %14 = vector.load %arg3[%c0_12, %c1_13, %c0_14, %c0_15] : memref<1x3x16x16xf32, #tpu.memory_space<vmem>>, vector<1x1x16x16xf32>
    %15 = vector.shape_cast %14 : vector<1x1x16x16xf32> to vector<16x16xf32>
    %cst_16 = arith.constant 0.000000e+00 : f32
    %cst_17 = arith.constant 2.550000e+02 : f32
    %16 = vector.broadcast %cst_16 : f32 to vector<16x16xf32>
    %17 = arith.maximumf %16, %13 : vector<16x16xf32>
    %18 = vector.broadcast %cst_17 : f32 to vector<16x16xf32>
    %19 = arith.minimumf %18, %17 : vector<16x16xf32>
    %20 = math.roundeven %19 : vector<16x16xf32>
    %21 = arith.subf %20, %15 : vector<16x16xf32>
    %cst_18 = arith.constant 0.00197697617 : f32
    %22 = vector.broadcast %cst_18 : f32 to vector<16x16xf32>
    %23 = arith.mulf %21, %22 : vector<16x16xf32>
    %24 = arith.addf %11, %23 : vector<16x16xf32>
    %c0_19 = arith.constant 0 : index
    %c2 = arith.constant 2 : index
    %c0_20 = arith.constant 0 : index
    %c0_21 = arith.constant 0 : index
    %25 = vector.load %arg2[%c0_19, %c2, %c0_20, %c0_21] : memref<1x3x16x16xf32, #tpu.memory_space<vmem>>, vector<1x1x16x16xf32>
    %26 = vector.shape_cast %25 : vector<1x1x16x16xf32> to vector<16x16xf32>
    %c0_22 = arith.constant 0 : index
    %c2_23 = arith.constant 2 : index
    %c0_24 = arith.constant 0 : index
    %c0_25 = arith.constant 0 : index
    %27 = vector.load %arg3[%c0_22, %c2_23, %c0_24, %c0_25] : memref<1x3x16x16xf32, #tpu.memory_space<vmem>>, vector<1x1x16x16xf32>
    %28 = vector.shape_cast %27 : vector<1x1x16x16xf32> to vector<16x16xf32>
    %cst_26 = arith.constant 0.000000e+00 : f32
    %cst_27 = arith.constant 2.550000e+02 : f32
    %29 = vector.broadcast %cst_26 : f32 to vector<16x16xf32>
    %30 = arith.maximumf %29, %26 : vector<16x16xf32>
    %31 = vector.broadcast %cst_27 : f32 to vector<16x16xf32>
    %32 = arith.minimumf %31, %30 : vector<16x16xf32>
    %33 = math.roundeven %32 : vector<16x16xf32>
    %34 = arith.subf %33, %28 : vector<16x16xf32>
    %cst_28 = arith.constant 3.83946084E-4 : f32
    %35 = vector.broadcast %cst_28 : f32 to vector<16x16xf32>
    %36 = arith.mulf %34, %35 : vector<16x16xf32>
    %37 = arith.addf %24, %36 : vector<16x16xf32>
    %38 = arith.mulf %37, %37 : vector<16x16xf32>
    %39 = tpu.iota {dimensions = array<i32: 0>} : vector<16x16xi32>
    %c16_i32 = arith.constant 16 : i32
    %40 = arith.muli %arg1, %c16_i32 : i32
    %41 = vector.broadcast %40 : i32 to vector<16x16xi32>
    %42 = arith.addi %39, %41 : vector<16x16xi32>
    %c2_i32 = arith.constant 2 : i32
    %43 = vector.broadcast %c2_i32 : i32 to vector<16x16xi32>
    %44 = arith.cmpi sge, %42, %43 : vector<16x16xi32>
    %c14_i32 = arith.constant 14 : i32
    %45 = vector.broadcast %c14_i32 : i32 to vector<16x16xi32>
    %46 = arith.cmpi slt, %42, %45 : vector<16x16xi32>
    %47 = arith.andi %44, %46 : vector<16x16xi1>
    %cst_29 = arith.constant 0.000000e+00 : f32
    %48 = vector.broadcast %cst_29 : f32 to vector<16x16xf32>
    %49 = arith.select %47, %38, %48 : vector<16x16xi1>, vector<16x16xf32>
    %cst_30 = arith.constant dense<0.000000e+00> : vector<16xf32>
    %50 = vector.multi_reduction <add>, %49, %cst_30 [0] : vector<16x16xf32> to vector<16xf32>
    %51 = vector.shape_cast %50 : vector<16xf32> to vector<1x16xf32>
    %52 = vector.shape_cast %51 : vector<1x16xf32> to vector<1x1x1x16xf32>
    %c0_31 = arith.constant 0 : index
    %c0_32 = arith.constant 0 : index
    %c0_33 = arith.constant 0 : index
    %c0_34 = arith.constant 0 : index
    %53 = vector.load %arg4[%c0_31, %c0_32, %c0_33, %c0_34] : memref<1x1x1x16xf32, #tpu.memory_space<vmem>>, vector<1x1x1x16xf32>
    tpu.vector_store %arg4[%c0_31, %c0_32, %c0_33, %c0_34], %52 {strides = array<i32>} : memref<1x1x1x16xf32, #tpu.memory_space<vmem>>, vector<1x1x1x16xf32>,
    return
  }
  func.func @transform_0(%arg0: i32, %arg1: i32) -> (i32, i32, i32, i32) {
    %c0_i32 = arith.constant 0 : i32
    %c0_i32_0 = arith.constant 0 : i32
    %c0_i32_1 = arith.constant 0 : i32
    return %arg0, %c0_i32, %arg1, %c0_i32_0 : i32, i32, i32, i32
  }
  func.func @transform_1(%arg0: i32, %arg1: i32) -> (i32, i32, i32, i32) {
    %c0_i32 = arith.constant 0 : i32
    %c0_i32_0 = arith.constant 0 : i32
    %c0_i32_1 = arith.constant 0 : i32
    return %arg0, %c0_i32, %arg1, %c0_i32_0 : i32, i32, i32, i32
  }
  func.func @transform_2(%arg0: i32, %arg1: i32) -> (i32, i32, i32, i32) {
    %c0_i32 = arith.constant 0 : i32
    %c0_i32_0 = arith.constant 0 : i32
    %c0_i32_1 = arith.constant 0 : i32
    return %arg0, %arg1, %c0_i32, %c0_i32_0 : i32, i32, i32, i32
  }
}

</mosaic_0001>

<bundles_post_ra>
// kernel: tpu_custom_call.1
= control target key start
LH: loop header
LB: loop body
LE: loop exit
PB: predicated region body
PF: predicated region fallthrough
CT: control target
= control target key end

     0   :  { %7 = vsyncpa [#allocation3], 0  ;;  %s898_s0 = inlined_call_operand.hbm [shape: f32[2,3,16,16], index: 0, kind: input, shape index: {}]   ;;  %s899_s1 = inlined_call_operand.hbm [shape: f32[2,3,16,16], index: 1, kind: input, shape index: {}]   ;;  %s900_s2 = inlined_call_operand.hbm [shape: f32[2,1,1,16], index: 2, kind: output, shape index: {}]  }
   0x1   :  { %9 = vsyncpa [#allocation3 + $0x1], 0 }
   0x2   :  { %10 = vsyncpa [#allocation6], 0 }
   0x3   :  { %12 = vsyncpa [#allocation6 + $0x1], 0 }
   0x4   :  { %13 = vsyncpa [#allocation4], 0 }
   0x5   :  { %15 = vsyncpa [#allocation4 + $0x1], 0  ;;  %s730_s9 = smov 0   ;;  %s732_s10 = smov 0  }
   0x6   :  { %s734_s11 = smov 0   ;;  %s736_s12 = smov 0  }
   0x7   :  { %s738_s13 = smov 0   ;;  %s740_s14 = smov 0  }
   0x8 LB: > { %s426_s15 = sadd.s32 4294967295, %s711_s14   ;;  %s427_s16 = sadd.s32 4294967294, %s711_s14   ;;  %s711_s14 = sphi %s740_s14, %s21_s14   ;;  %s707_s13 = sphi %s738_s13, %s916_s13   ;;  %s703_s12 = sphi %s736_s12, %s915_s12   ;;  %s699_s11 = sphi %s734_s11, %s914_s11   ;;  %s695_s10 = sphi %s732_s10, %s913_s10   ;;  %s691_s9 = sphi %s730_s9, %s912_s9  }
   0x9   : > { %s33_s17 = sadd.s32 1, %s707_s13  ;;  %s42_s18 = sadd.s32 1, %s699_s11 }
   0xa   : > { %p35_p0 = scmp.ge.s32.totalorder %s33_s17, 2  ;;  %p49_p1 = scmp.ne.s32.totalorder %s699_s11, %s695_s10 }
   0xb   : > { %p50_p2 = scmp.eq.s32.totalorder %s711_s14, 0  ;;  %p55_p3 = scmp.ne.s32.totalorder %s695_s10, %s691_s9 }
   0xc   : > { %s918_s17 = smov (%p35_p0, %s33_s17), 0  ;;  %p56_p5 = scmp.eq.s32.totalorder %s426_s15, 0 }
   0xd   : > { %p771_p4 = por %p50_p2, %p49_p1  ;;  %s37_s20 = ssub.s32 %s707_s13, %s918_s17 }
   0xe   : > { %p109_p6 = scmp.eq.s32.totalorder %s426_s15, 1  ;;  %p40_p7 = scmp.eq.s32.totalorder %s37_s20, 0 }
   0xf   : > { %p777_p8 = por %p56_p5, %p55_p3  ;;  %p115_p10 = scmp.eq.s32.totalorder %s427_s16, 1 }
  0x10   : > { %p781_p9 = por %p109_p6, %p49_p1  ;;  %p429_p12 = scmp.ge.s32.totalorder %s711_s14, 2 }
  0x11   : > { %s786_s23 = scalar_select %p40_p7, %s699_s11, %s42_s18  }
  0x12   : > { %p788_p11 = por %p115_p10, %p55_p3  ;;  %p513_p13 = scmp.lt.s32.totalorder %s711_s14, 2 }
  0x13   : > { %s795_s25 = sand.u32 1, %s699_s11   ;;  %s444_s27 = smul.u32 48, %s707_s13 }
  0x14   : > { %s443_s26 = smul.u32 48, %s795_s25  ;;  %p801_p0 = pnand %p513_p13, %p771_p4 }
  0x15   : > { %s146_s3 = scalar_lea.hbm %s898_s0, %s444_s27  ;;  %p432_p1 = scmp.ge.s32.totalorder %s711_s14, 1 }
  0x16   : > { %s139_s4 = scalar_lea.vmem [#allocation2], %s443_s26  ;;  %s147_s6 = sshll.u32 %s146_s3, 4  ;;  %s148_s6 = int_to_ptr.hbm [resolvable:$true] %s147_s6 }
  0x17   : > { %s149_s5 = sshll.u32 %s139_s4, 4  ;;  %s136_s7 = scalar_lea.sflag [#allocation3], %s795_s25  ;;  %s150_s5 = int_to_ptr.vmem [resolvable:$true] %s149_s5 }
  0x18   : > { %s713_s8 = smov 128   ;;  %s714_s15 = smov 8  }
  0x19   : > { %505 = dma.hbm_to_vmem [thread:$0]  (!%p801_p0), %s148_s6, 768, %s150_s5, %s136_s7, %s713_s8, %s713_s8, %s714_s15  }
  0x1a   : > { %p181_p2 = scmp.lt.s32.totalorder %s711_s14, 3  ;;  %s170_s19 = scalar_lea.hbm %s899_s1, %s444_s27 }
  0x1b   : > { %s171_s20 = sshll.u32 %s170_s19, 4  ;;  %s163_s29 = scalar_lea.vmem [#allocation5], %s443_s26  ;;  %s172_s20 = int_to_ptr.hbm [resolvable:$true] %s171_s20 }
  0x1c   : > { %p182_p3 = pnand %p432_p1, %p181_p2  ;;  %s173_s30 = sshll.u32 %s163_s29, 4  ;;  %s174_s30 = int_to_ptr.vmem [resolvable:$true] %s173_s30 }
  0x1d   : > { %s160_s3 = scalar_lea.sflag [#allocation6], %s795_s25  ;;  %s820_s4 = sand.u32 (!%p182_p3), 1, %s695_s10  }
  0x1e   : > { %508 = dma.hbm_to_vmem [thread:$0]  (!%p801_p0), %s172_s20, 768, %s174_s30, %s160_s3, %s713_s8, %s713_s8, %s714_s15  }
  0x1f   : > { %185 = sbr.rel (%p182_p3) target bundleno = 90 (0x5a), region = 28  ;;  %s188_s6 = scalar_lea.sflag (!%p182_p3), [#allocation3], %s820_s4 }
  0x20   : > { %s447_s5 = smul.u32 (!%p182_p3), 48, %s820_s4 }
  0x22   : > { %s191_s7 = scalar_lea.vmem (!%p182_p3), [#allocation2], %s447_s5 }
  0x24   : > { %678 = dma.done.wait (%p777_p8), %s188_s6, 768  }
  0x25   : > { %680 = vsyncadd (%p777_p8), %s188_s6, 4294966528  ;;  %s198_s25 = scalar_lea.sflag [#allocation6], %s820_s4  ;;  %s829_s26 = scalar_lea.vmem [#allocation5], %s447_s5 }
  0x26   : > { %682 = dma.done.wait (%p777_p8), %s198_s25, 768  }
  0x27   : > { %684 = vsyncadd (%p777_p8), %s198_s25, 4294966528  ;;  %v229_v0 = vld [vmem:[%s191_s7] sm:$0xff]  ;;  %v230_v1 = vld [vmem:[%s191_s7 + $0x8] sm:$0xff]  ;;  %vm296_vm7 = vcmask 130048   ;;  %s318_s28 = scalar_lea.hbm %s900_s2, %s703_s12  ;;  %s226_s8 = scalar_lea.vmem [#allocation7], %s820_s4  ;;  %vm306_vm9 = vcmask 122880  }
  0x28   : > { %v233_v2 = vmax.f32 %v229_v0, 0.0  ;;  %v234_v3 = vmax.f32 %v230_v1, 0.0  ;;  %v433_v4 = vld [vmem:[%s191_s7 + $0x10] sm:$0xff]  ;;  %v434_v5 = vld [vmem:[%s191_s7 + $0x18] sm:$0xff]  ;;  %v437_v8 = vld [vmem:[%s191_s7 + $0x20] sm:$0xff]  ;;  %s320_s15 = sshll.u32 %s226_s8, 4  ;;  %s321_s15 = int_to_ptr.vmem [resolvable:$true] %s320_s15 }
  0x29   : > { %v249_v6 = vmax.f32 %v433_v4, 0.0  ;;  %v250_v7 = vmax.f32 %v434_v5, 0.0  ;;  %v438_v11 = vld [vmem:[%s191_s7 + $0x28] sm:$0xff]  ;;  %v267_v13 = vmax.f32 %v437_v8, 0.0  ;;  %v231_v37 = vld [vmem:[%s829_s26] sm:$0xff]  ;;  %v435_v43 = vld [vmem:[%s829_s26 + $0x10] sm:$0xff] }
  0x2a   : > { %v235_v9 = vmin.f32 %v233_v2, 255.0  ;;  %v236_v10 = vmin.f32 %v234_v3, 255.0  ;;  %v268_v21 = vmax.f32 %v438_v11, 0.0  ;;  %v232_v51 = vld [vmem:[%s829_s26 + $0x8] sm:$0xff]  ;;  %v436_v55 = vld [vmem:[%s829_s26 + $0x18] sm:$0xff]  ;;  %v439_v1 = vld [vmem:[%s829_s26 + $0x20] sm:$0xff] }
  0x2b   : > { %v251_v12 = vmin.f32 %v249_v6, 255.0  ;;  %v252_v17 = vmin.f32 %v250_v7, 255.0  ;;  %v269_v33 = vmin.f32 %v267_v13, 255.0  ;;  %v281_v6 = vlaneseq  ;;  %v440_v13 = vld [vmem:[%s829_s26 + $0x28] sm:$0xff]  ;;  %s322_s16 = sshll.u32 %s318_s28, 4  ;;  %s309_s18 = scalar_lea.sflag [#allocation4], %s820_s4  ;;  %s323_s16 = int_to_ptr.hbm [resolvable:$true] %s322_s16 }
  0x2c   : > { %v448_v14 = vand.u32 2147483647, %v235_v9  ;;  %v450_v15 = vcvt.f32.s32 %v235_v9  ;;  %v456_v16 = vand.u32 2147483647, %v236_v10  ;;  %v458_v18 = vcvt.f32.s32 %v236_v10  ;;  %s639_s19 = sshra.s32 %s323_s16, 4  ;;  %s645_s30 = scalar_lea.hbm %s900_s2, 2  ;;  %s640_s19 = int_to_ptr.hbm [resolvable:$true] %s639_s19 }
  0x2d   : > { %v464_v19 = vand.u32 2147483647, %v251_v12  ;;  %v466_v20 = vcvt.f32.s32 %v251_v12  ;;  %v453_v24 = vand.u32 2147483648, %v235_v9  ;;  %v461_v25 = vand.u32 2147483648, %v236_v10  ;;  %s641_s20 = scalar_lea.hbm %s640_s19, 1  ;;  %p646_p7 = scmp.lt.s32.totalorder %s640_s19, %s900_s2 }
  0x2e   : > { %vm835_vm0 = vcmp.lt.f32.partialorder %v448_v14, 8388608.0  ;;  %v451_v23 = vcvt.s32.f32 %v450_v15  ;;  %vm839_vm1 = vcmp.lt.f32.partialorder %v456_v16, 8388608.0  ;;  %v459_v27 = vcvt.s32.f32 %v458_v18  ;;  %p642_p4 = scmp.ne.s32.totalorder %s640_s19, %s641_s20  ;;  %p647_p8 = scmp.lt.s32.totalorder %s645_s30, %s641_s20 }
  0x2f   : > { %v467_v28 = vcvt.s32.f32 %v466_v20  ;;  %v469_v29 = vand.u32 2147483648, %v251_v12  ;;  %vm843_vm2 = vcmp.lt.f32.partialorder %v464_v19, 8388608.0  ;;  %v474_v32 = vcvt.f32.s32 %v252_v17 }
  0x30   : > { %v452_v30 = vand.u32 2147483647, %v451_v23  ;;  %v460_v34 = vand.u32 2147483647, %v459_v27  ;;  %v472_v36 = vand.u32 2147483647, %v252_v17  ;;  %v482_v41 = vcvt.f32.s32 %v269_v33  ;;  %p643_p5 = pnand %p642_p4, %p781_p9  ;;  %p648_p10 = por %p647_p8, %p646_p7 }
  0x31   : > { %v468_v35 = vand.u32 2147483647, %v467_v28  ;;  %v475_v39 = vcvt.s32.f32 %v474_v32  ;;  %v477_v40 = vand.u32 2147483648, %v252_v17  ;;  %v270_v45 = vmin.f32 %v268_v21, 255.0 }
  0x32   : > { %v454_v38 = vor.u32 %v453_v24, %v452_v30  ;;  %v462_v42 = vor.u32 %v461_v25, %v460_v34  ;;  %v480_v46 = vand.u32 2147483647, %v269_v33  ;;  %v483_v49 = vcvt.s32.f32 %v482_v41  ;;  %p644_p6 = pneg %p643_p5 }
  0x33   : > { %v470_v44 = vor.u32 %v469_v29, %v468_v35  ;;  %v476_v48 = vand.u32 2147483647, %v475_v39  ;;  %v485_v50 = vand.u32 2147483648, %v269_v33  ;;  %vm473_vm3 = vcmp.lt.f32.partialorder %v472_v36, 8388608.0 }
  0x34   : > { %v455_v47 = vsel %vm835_vm0, %v454_v38, %v235_v9  ;;  %v463_v52 = vsel %vm839_vm1, %v462_v42, %v236_v10  ;;  %v484_v58 = vand.u32 2147483647, %v483_v49  ;;  %vm481_vm4 = vcmp.lt.f32.partialorder %v480_v46, 8388608.0  ;;  %p649_p13 = pnand %p648_p10, %p644_p6 }
  0x35   : > { %v239_v53 = vsub.f32 %v455_v47, %v231_v37  ;;  %v471_v54 = vsel %vm843_vm2, %v470_v44, %v251_v12  ;;  %v478_v56 = vor.u32 %v477_v40, %v476_v48  ;;  %v488_v60 = vand.u32 2147483647, %v270_v45 }
  0x36   : > { %v255_v57 = vsub.f32 %v471_v54, %v435_v43  ;;  %v490_v61 = vcvt.f32.s32 %v270_v45  ;;  %v240_v62 = vsub.f32 %v463_v52, %v232_v51  ;;  %v486_v2 = vor.u32 %v485_v50, %v484_v58 }
  0x37   : > { %v241_v59 = vmul.f32 0.0010070159, %v239_v53  ;;  %v479_v63 = vsel %vm473_vm3, %v478_v56, %v252_v17  ;;  %v493_v5 = vand.u32 2147483648, %v270_v45  ;;  %vm489_vm5 = vcmp.lt.f32.partialorder %v488_v60, 8388608.0 }
  0x38   : > { %v257_v0 = vmul.f32 0.0019769762, %v255_v57  ;;  %v256_v3 = vsub.f32 %v479_v63, %v436_v55  ;;  %v491_v4 = vcvt.s32.f32 %v490_v61  ;;  %v487_v7 = vsel %vm481_vm4, %v486_v2, %v269_v33 }
  0x39   : > { %v273_v10 = vsub.f32 %v487_v7, %v439_v1  ;;  %v242_v11 = vmul.f32 0.0010070159, %v240_v62  ;;  %v282_v16 = vshrl.u32 %v281_v6, 7 }
  0x3a   : > { %v259_v8 = vadd.f32 %v257_v0, %v241_v59  ;;  %v492_v9 = vand.u32 2147483647, %v491_v4  ;;  %v258_v12 = vmul.f32 0.0019769762, %v256_v3 }
  0x3b   : > { %v275_v15 = vmul.f32 0.00038394608, %v273_v10  ;;  %v283_v22 = vadd.s32 8, %v282_v16  ;;  %vm288_vm6 = vcmp.ge.s32.totalorder %v282_v16, 2 }
  0x3c   : > { %v494_v14 = vor.u32 %v493_v5, %v492_v9  ;;  %v260_v19 = vadd.f32 %v258_v12, %v242_v11 }
  0x3d   : > { %v277_v17 = vadd.f32 %v275_v15, %v259_v8  ;;  %vm291_vm8 = vcmp.lt.s32.totalorder %v283_v22, 14 }
  0x3e   : > { %v495_v18 = vsel %vm489_vm5, %v494_v14, %v270_v45 }
  0x3f   : > { %v274_v20 = vsub.f32 %v495_v18, %v440_v13  ;;  %v279_v21 = vmul.f32 %v277_v17, %v277_v17 }
  0x41   : > { %v276_v23 = vmul.f32 0.00038394608, %v274_v20  ;;  %v294_v25 = vsel %vm288_vm6, %v279_v21, 0.0 }
  0x42   : > { %v297_v27 = vsel %vm296_vm7, %v294_v25, 0.0 }
  0x43   : > { %v278_v24 = vadd.f32 %v276_v23, %v260_v19 }
  0x45   : > { %v280_v26 = vmul.f32 %v278_v24, %v278_v24 }
  0x47   : > { %v295_v28 = vsel %vm291_vm8, %v280_v26, 0.0 }
  0x48   : > { %v298_v29 = vsel %vm296_vm7, %v295_v28, 0.0 }
  0x49   : > { %v299_v30 = vadd.f32 %v298_v29, %v297_v27 }
  0x4b   : > { %v300_v31 = vrot.slane %v299_v30, 4 }
  0x4d   : > { %v301_v32 = vadd.f32 %v300_v31, %v299_v30 }
  0x4f   : > { %v302_v33 = vrot.slane %v301_v32, 2 }
  0x51   : > { %v303_v34 = vadd.f32 %v302_v33, %v301_v32 }
  0x53   : > { %v304_v35 = vrot.slane %v303_v34, 1 }
  0x55   : > { %v305_v36 = vadd.f32 %v304_v35, %v303_v34 }
  0x57   : > { %307 = vst.msk [vmem:[%s226_s8] sm:$0x1] %vm306_vm9, %v305_v36 }
  0x58   : > { %652 = shalt.err (!%p649_p13)
}
  0x59   : > { %500 = dma.vmem_to_hbm [thread:$0]  (%p781_p9), %s321_s15, 16, %s323_s16, %s309_s18  }
  0x5a PF: > { %s334_s4 = sand.u32 1, %s691_s9   ;;  %p510_p0 = pnand %p429_p12, %p788_p11 }
  0x5b   : > { %s335_s6 = scalar_lea.sflag [#allocation4], %s334_s4 }
  0x5c   : > { %p511_p1 = pneg %p510_p0 }
  0x5e   : > { %686 = dma.done.wait (%p511_p1), %s335_s6, 16  }
  0x5f   : > { %688 = vsyncadd (%p511_p1), %s335_s6, 4294967280  ;;  %s21_s14 = sadd.s32 1, %s711_s14   ;;  %s912_s9 = smov %s695_s10 }
  0x60   : > { %p18_p2 = scmp.ge.s32.totalorder %s21_s14, 4   ;;  %s913_s10 = smov %s699_s11 }
  0x61   : > { %s914_s11 = smov %s786_s23  ;;  %s915_s12 = smov %s707_s13 }
  0x62   : > { %s916_s13 = smov %s918_s17  ;;  %20 = sbr.rel (!%p18_p2) target bundleno = 8 (0x8), region = 90 }
  0x67   :  { %340 = vsyncpa [#allocation3], 1 }
  0x68   :  { %342 = vsyncpa [#allocation3 + $0x1], 1 }
  0x69   :  { %343 = vsyncpa [#allocation6], 1 }
  0x6a   :  { %345 = vsyncpa [#allocation6 + $0x1], 1 }
  0x6b   :  { %346 = vsyncpa [#allocation4], 1 }
  0x6c   :  { %348 = vsyncpa [#allocation4 + $0x1], 1 }

</bundles_post_ra>
